<compile_context>
chip_gen: v5e
topology: v5e:2x2
jax: 0.10.0
libtpu: 0.0.40
codegen_flags: <defaults>
</compile_context>

<pallas_src>
import functools

import jax
import jax.numpy as jnp
from jax.experimental import pallas as pl
from jax.experimental.pallas import tpu as pltpu

DROPOUT_P = 0.3


def _round_up(x, m):
    return ((x + m - 1) // m) * m


def _choose_block_h(H, target=512):
    """Largest 128-aligned divisor of H that is <= target (or H itself if small/odd)."""
    if H <= target:
        return H
    for cand in range(target, 127, -128):
        if H % cand == 0:
            return cand
    return H


def _ffwd_kernel(x_ref, w1_ref, b1_ref, w2_ref, b2_ref, *rest, p, training):
    # Grid: (row_tiles "parallel", h_blocks "arbitrary").
    # x_ref:(tm,D)  w1_ref:(D,th)  b1_ref:(1,th)  w2_ref:(th,D)  b2_ref:(1,D)
    # rand_ref (training only):(tm,D)  o_ref:(tm,D)  acc_ref:(tm,D) f32 scratch
    if training:
        rand_ref, o_ref, acc_ref = rest
    else:
        o_ref, acc_ref = rest
        rand_ref = None

    j = pl.program_id(1)

    @pl.when(j == 0)
    def _init():
        acc_ref[...] = jnp.zeros_like(acc_ref)

    # Linear 1 (bf16 MXU inputs, f32 accumulate) + bias + ReLU for this H-block.
    xb = x_ref[...].astype(w1_ref.dtype)
    h = jnp.dot(xb, w1_ref[...], preferred_element_type=jnp.float32)
    h = jnp.maximum(h + b1_ref[...], 0.0)

    # Linear 2 partial sum over this H-block (bf16 MXU input, f32 accumulator).
    acc_ref[...] += jnp.dot(h.astype(w2_ref.dtype), w2_ref[...],
                            preferred_element_type=jnp.float32)

    @pl.when(j == pl.num_programs(1) - 1)
    def _finalize():
        y = acc_ref[...] + b2_ref[...]
        if training:
            # Inverted dropout: one compare + one select + one mul per element.
            keep = rand_ref[...] >= p
            y = jnp.where(keep, y * (1.0 / (1.0 - p)), 0.0)
        o_ref[...] = y.astype(o_ref.dtype)


def feed_forward(x, w1, b1, w2, b2, *, training=False, dropout_key=None,
                 p=DROPOUT_P, tile_m=256, block_h=512,
                 weight_dtype=jnp.bfloat16):
    """x: (..., D) -> (..., D). Two matmuls + ReLU [+ dropout] in one Pallas kernel."""
    orig_shape = x.shape
    D = orig_shape[-1]
    H = w1.shape[1]
    assert w1.shape == (D, H) and w2.shape == (H, D)

    xf = x.reshape(-1, D)
    N = xf.shape[0]

    # Row tiling: large tiles keep the MXU fed; pad N so the grid divides evenly.
    tm = min(tile_m, _round_up(max(N, 8), 8))
    n_pad = _round_up(N, tm)
    if n_pad != N:
        xf = jnp.pad(xf, ((0, n_pad - N), (0, 0)))

    # Hidden-dim tiling (reduction axis of the second matmul).
    th = _choose_block_h(H, block_h)
    n_hblk = H // th

    # bf16 weights: MXU-native inputs, half the VMEM residency and HBM->VMEM DMA bytes.
    w1c = w1.astype(weight_dtype)
    w2c = w2.astype(weight_dtype)
    b1f = b1.reshape(1, H).astype(jnp.float32)
    b2f = b2.reshape(1, D).astype(jnp.float32)

    use_dropout = bool(training) and p > 0.0
    if use_dropout:
        assert p < 1.0, "dropout p must be < 1"
        if dropout_key is None:
            dropout_key = jax.random.PRNGKey(0)
        rand = jax.random.uniform(dropout_key, (n_pad, D), jnp.float32)

    kernel = functools.partial(_ffwd_kernel, p=float(p), training=use_dropout)

    in_specs = [
        pl.BlockSpec((tm, D), lambda i, j: (i, 0)),   # x rows (revisited across j)
        pl.BlockSpec((D, th), lambda i, j: (0, j)),   # W1 H-slab
        pl.BlockSpec((1, th), lambda i, j: (0, j)),   # b1 H-slab
        pl.BlockSpec((th, D), lambda i, j: (j, 0)),   # W2 H-slab
        pl.BlockSpec((1, D), lambda i, j: (0, 0)),    # b2 (constant block)
    ]
    operands = [xf, w1c, b1f, w2c, b2f]
    if use_dropout:
        in_specs.append(pl.BlockSpec((tm, D), lambda i, j: (i, 0)))   # dropout uniforms
        operands.append(rand)

    # VMEM budget estimate (double-buffered inputs + accumulator + intermediates),
    # capped at 64 MiB so it is valid on v7x as well as v5e/v6e.
    w_item = jnp.dtype(weight_dtype).itemsize
    x_item = xf.dtype.itemsize
    vmem_est = int(
        2 * 2 * D * th * w_item          # W1 + W2 slabs, double-buffered
        + 2 * tm * D * x_item            # x tile
        + 2 * tm * D * x_item            # out tile
        + (2 * tm * D * 4 if use_dropout else 0)
        + tm * D * 4                     # f32 accumulator scratch
        + tm * th * 4                    # h intermediate
        + 2 * (th + D) * 4               # biases
    )
    vmem_limit = max(32 * 1024 * 1024, min(64 * 1024 * 1024, int(vmem_est * 1.5)))

    flops = 2 * n_pad * D * H * 2        # two matmuls
    bytes_accessed = int(
        xf.size * x_item + (w1c.size + w2c.size) * w_item
        + n_pad * D * x_item + (n_pad * D * 4 if use_dropout else 0))

    out = pl.pallas_call(
        kernel,
        out_shape=jax.ShapeDtypeStruct((n_pad, D), x.dtype),
        grid_spec=pltpu.PrefetchScalarGridSpec(
            num_scalar_prefetch=0,
            grid=(n_pad // tm, n_hblk),
            in_specs=in_specs,
            out_specs=pl.BlockSpec((tm, D), lambda i, j: (i, 0)),
            scratch_shapes=[pltpu.VMEM((tm, D), jnp.float32)],
        ),
        compiler_params=pltpu.CompilerParams(
            dimension_semantics=("parallel", "arbitrary"),
            vmem_limit_bytes=vmem_limit,
        ),
        cost_estimate=pl.CostEstimate(
            flops=flops, transcendentals=0, bytes_accessed=bytes_accessed),
    )(*operands)

    if n_pad != N:
        out = out[:N]
    return out.reshape(orig_shape)


def init_params(key, d_model):
    """Mirror torch.nn.Linear default init: U(-1/sqrt(fan_in), 1/sqrt(fan_in))."""
    h = 4 * d_model
    k1, k2, k3, k4 = jax.random.split(key, 4)
    lim1 = 1.0 / jnp.sqrt(d_model)
    lim2 = 1.0 / jnp.sqrt(h)
    w1 = jax.random.uniform(k1, (d_model, h), jnp.float32, -lim1, lim1)
    b1 = jax.random.uniform(k2, (1, h), jnp.float32, -lim1, lim1)
    w2 = jax.random.uniform(k3, (h, d_model), jnp.float32, -lim2, lim2)
    b2 = jax.random.uniform(k4, (1, d_model), jnp.float32, -lim2, lim2)
    return w1, b1, w2, b2


if __name__ == "__main__":
    # Small shapes consistent with the module: (batch, block_size, n_embd).
    batch, seq, d_model = 2, 8, 32
    key = jax.random.PRNGKey(0)
    kx, kp, kd = jax.random.split(key, 3)
    x = jax.random.normal(kx, (batch, seq, d_model), jnp.float32)
    w1, b1, w2, b2 = init_params(kp, d_model)

    # Eval mode (dropout = identity): deterministic and checkable.
    y = jax.block_until_ready(feed_forward(x, w1, b1, w2, b2, training=False))

    # Pure-JAX reference using the same bf16 matmul-input casts as the kernel.
    xf = x.reshape(-1, d_model)
    w1b = w1.astype(jnp.bfloat16)
    w2b = w2.astype(jnp.bfloat16)
    h_ref = jnp.maximum(
        jnp.dot(xf.astype(jnp.bfloat16), w1b, preferred_element_type=jnp.float32) + b1,
        0.0)
    ref = jnp.dot(h_ref.astype(jnp.bfloat16), w2b,
                  preferred_element_type=jnp.float32) + b2
    ref = ref.reshape(x.shape)
    assert jnp.allclose(y, ref, atol=5e-3, rtol=5e-2), "mismatch vs reference"

    # Exercise the training (dropout) path once.
    y_tr = jax.block_until_ready(
        feed_forward(x, w1, b1, w2, b2, training=True, dropout_key=kd))
    assert y_tr.shape == x.shape
    drop_frac = float(jnp.mean(y_tr == 0.0))
    assert 0.1 < drop_frac < 0.5, f"unexpected dropout rate {drop_frac}"

    print("KERNEL_OK")
</pallas_src>

<mosaic_0001>
module attributes {stable_mosaic.version = 11 : i64} {
  func.func @_ffwd_kernel(%arg0: i32, %arg1: i32, %arg2: memref<16x32xf32, #tpu.memory_space<vmem>>, %arg3: memref<32x128xbf16, #tpu.memory_space<vmem>>, %arg4: memref<1x128xf32, #tpu.memory_space<vmem>>, %arg5: memref<128x32xbf16, #tpu.memory_space<vmem>>, %arg6: memref<1x32xf32, #tpu.memory_space<vmem>>, %arg7: memref<16x32xf32, #tpu.memory_space<vmem>>, %arg8: memref<16x32xf32, #tpu.memory_space<vmem>>) attributes {dimension_semantics = [#tpu.dimension_semantics<parallel>, #tpu.dimension_semantics<arbitrary>], iteration_bounds = array<i64: 1, 1>, scalar_prefetch = 0 : i64, scratch_operands = 1 : i64, tpu.core_type = #tpu.core_type<tc>, window_params = [{transform_indices = @transform_0, window_bounds = array<i64: 16, 32>}, {transform_indices = @transform_1, window_bounds = array<i64: 32, 128>}, {transform_indices = @transform_2, window_bounds = array<i64: 1, 128>}, {transform_indices = @transform_3, window_bounds = array<i64: 128, 32>}, {pipeline_mode = #tpu.pipeline_mode<synchronous>, transform_indices = @transform_4, window_bounds = array<i64: 1, 32>}, {transform_indices = @transform_5, window_bounds = array<i64: 16, 32>}]} {
    %c0_i32 = arith.constant 0 : i32
    %0 = arith.cmpi eq, %arg1, %c0_i32 : i32
    %1 = arith.extui %0 : i1 to i32
    %c0_i32_0 = arith.constant 0 : i32
    %2 = arith.cmpi ne, %1, %c0_i32_0 : i32
    scf.if %2 {
      %cst_16 = arith.constant 0.000000e+00 : f32
      %21 = vector.broadcast %cst_16 : f32 to vector<16x32xf32>
      %c0_17 = arith.constant 0 : index
      %c0_18 = arith.constant 0 : index
      %22 = vector.load %arg8[%c0_17, %c0_18] : memref<16x32xf32, #tpu.memory_space<vmem>>, vector<16x32xf32>
      tpu.vector_store %arg8[%c0_17, %c0_18], %21 {strides = array<i32>} : memref<16x32xf32, #tpu.memory_space<vmem>>, vector<16x32xf32>,
    } else {
    }
    %c0 = arith.constant 0 : index
    %c0_1 = arith.constant 0 : index
    %3 = vector.load %arg2[%c0, %c0_1] : memref<16x32xf32, #tpu.memory_space<vmem>>, vector<16x32xf32>
    %4 = arith.truncf %3 : vector<16x32xf32> to vector<16x32xbf16>
    %c0_2 = arith.constant 0 : index
    %c0_3 = arith.constant 0 : index
    %5 = vector.load %arg3[%c0_2, %c0_3] : memref<32x128xbf16, #tpu.memory_space<vmem>>, vector<32x128xbf16>
    %cst = arith.constant dense<0.000000e+00> : vector<16x128xf32>
    %6 = tpu.matmul %4, %5, %cst {dimension_numbers = #tpu.dot_dimension_numbers<[1], [0], [0], [1], [0, 0, 1, 1], [], []>} : vector<16x32xbf16>, vector<32x128xbf16>, vector<16x128xf32> -> vector<16x128xf32>
    %c0_4 = arith.constant 0 : index
    %c0_5 = arith.constant 0 : index
    %7 = vector.load %arg4[%c0_4, %c0_5] : memref<1x128xf32, #tpu.memory_space<vmem>>, vector<1x128xf32>
    %8 = vector.broadcast %7 : vector<1x128xf32> to vector<16x128xf32>
    %9 = arith.addf %6, %8 : vector<16x128xf32>
    %cst_6 = arith.constant 0.000000e+00 : f32
    %10 = vector.broadcast %cst_6 : f32 to vector<16x128xf32>
    %11 = arith.maximumf %9, %10 : vector<16x128xf32>
    %c0_7 = arith.constant 0 : index
    %c0_8 = arith.constant 0 : index
    %12 = vector.load %arg8[%c0_7, %c0_8] : memref<16x32xf32, #tpu.memory_space<vmem>>, vector<16x32xf32>
    %13 = arith.truncf %11 : vector<16x128xf32> to vector<16x128xbf16>
    %c0_9 = arith.constant 0 : index
    %c0_10 = arith.constant 0 : index
    %14 = vector.load %arg5[%c0_9, %c0_10] : memref<128x32xbf16, #tpu.memory_space<vmem>>, vector<128x32xbf16>
    %cst_11 = arith.constant dense<0.000000e+00> : vector<16x32xf32>
    %15 = tpu.matmul %13, %14, %cst_11 {dimension_numbers = #tpu.dot_dimension_numbers<[1], [0], [0], [1], [0, 0, 1, 1], [], []>} : vector<16x128xbf16>, vector<128x32xbf16>, vector<16x32xf32> -> vector<16x32xf32>
    %16 = arith.addf %12, %15 : vector<16x32xf32>
    %c0_12 = arith.constant 0 : index
    %c0_13 = arith.constant 0 : index
    %17 = vector.load %arg8[%c0_12, %c0_13] : memref<16x32xf32, #tpu.memory_space<vmem>>, vector<16x32xf32>
    tpu.vector_store %arg8[%c0_12, %c0_13], %16 {strides = array<i32>} : memref<16x32xf32, #tpu.memory_space<vmem>>, vector<16x32xf32>,
    %c0_i32_14 = arith.constant 0 : i32
    %18 = arith.cmpi eq, %arg1, %c0_i32_14 : i32
    %19 = arith.extui %18 : i1 to i32
    %c0_i32_15 = arith.constant 0 : i32
    %20 = arith.cmpi ne, %19, %c0_i32_15 : i32
    scf.if %20 {
      %c0_16 = arith.constant 0 : index
      %c0_17 = arith.constant 0 : index
      %21 = vector.load %arg8[%c0_16, %c0_17] : memref<16x32xf32, #tpu.memory_space<vmem>>, vector<16x32xf32>
      %c0_18 = arith.constant 0 : index
      %c0_19 = arith.constant 0 : index
      %22 = vector.load %arg6[%c0_18, %c0_19] : memref<1x32xf32, #tpu.memory_space<vmem>>, vector<1x32xf32>
      %23 = vector.broadcast %22 : vector<1x32xf32> to vector<16x32xf32>
      %24 = arith.addf %21, %23 : vector<16x32xf32>
      %c0_20 = arith.constant 0 : index
      %c0_21 = arith.constant 0 : index
      %25 = vector.load %arg7[%c0_20, %c0_21] : memref<16x32xf32, #tpu.memory_space<vmem>>, vector<16x32xf32>
      tpu.vector_store %arg7[%c0_20, %c0_21], %24 {strides = array<i32>} : memref<16x32xf32, #tpu.memory_space<vmem>>, vector<16x32xf32>,
    } else {
    }
    return
  }
  func.func @transform_0(%arg0: i32, %arg1: i32) -> (i32, i32) {
    %c0_i32 = arith.constant 0 : i32
    %c0_i32_0 = arith.constant 0 : i32
    return %arg0, %c0_i32 : i32, i32
  }
  func.func @transform_1(%arg0: i32, %arg1: i32) -> (i32, i32) {
    %c0_i32 = arith.constant 0 : i32
    %c0_i32_0 = arith.constant 0 : i32
    return %c0_i32, %arg1 : i32, i32
  }
  func.func @transform_2(%arg0: i32, %arg1: i32) -> (i32, i32) {
    %c0_i32 = arith.constant 0 : i32
    %c0_i32_0 = arith.constant 0 : i32
    return %c0_i32, %arg1 : i32, i32
  }
  func.func @transform_3(%arg0: i32, %arg1: i32) -> (i32, i32) {
    %c0_i32 = arith.constant 0 : i32
    %c0_i32_0 = arith.constant 0 : i32
    return %arg1, %c0_i32 : i32, i32
  }
  func.func @transform_4(%arg0: i32, %arg1: i32) -> (i32, i32) {
    %c0_i32 = arith.constant 0 : i32
    %c0_i32_0 = arith.constant 0 : i32
    %c0_i32_1 = arith.constant 0 : i32
    return %c0_i32, %c0_i32_0 : i32, i32
  }
  func.func @transform_5(%arg0: i32, %arg1: i32) -> (i32, i32) {
    %c0_i32 = arith.constant 0 : i32
    %c0_i32_0 = arith.constant 0 : i32
    return %arg0, %c0_i32 : i32, i32
  }
}

</mosaic_0001>

<bundles_post_ra>
// kernel: tpu_custom_call.1
= control target key start
LH: loop header
LB: loop body
LE: loop exit
PB: predicated region body
PF: predicated region fallthrough
CT: control target
= control target key end

     0   :  { %s357_s0 = inlined_call_operand.vmem [shape: f32[16,32], index: 0, kind: input, shape index: {}]   ;;  %s358_s1 = inlined_call_operand.vmem [shape: bf16[32,128], index: 1, kind: input, shape index: {}]   ;;  %s359_s2 = inlined_call_operand.vmem [shape: f32[1,128], index: 2, kind: input, shape index: {}]   ;;  %s360_s3 = inlined_call_operand.vmem [shape: bf16[128,32], index: 3, kind: input, shape index: {}]   ;;  %s361_s4 = inlined_call_operand.vmem [shape: f32[1,32], index: 4, kind: input, shape index: {}]   ;;  %s362_s5 = inlined_call_operand.hbm [shape: f32[16,32], index: 5, kind: output, shape index: {}]  }
   0x1   :  { %v230_v0 = vld [vmem:[%s358_s1 + $0x8] sm:$0xff]  ;;  %v229_v1 = vld [vmem:[%s358_s1] sm:$0xff]  ;;  %v238_v2 = vld [vmem:[%s360_s3 + $0x38] sm:$0xff] }
   0x2   :  { %62 = vmatpush.bf16.msra.mxu0 %v230_v0  ;;  %v29_v3 = vld [vmem:[%s357_s0] sm:$0xff]  ;;  %v30_v4 = vld [vmem:[%s357_s0 + $0x8] sm:$0xff]  ;;  %139 = vmatpush.bf16.msra.mxu1 %v238_v2  ;;  %v237_v5 = vld [vmem:[%s360_s3 + $0x30] sm:$0xff] }
   0x3   :  { %10 = vsyncpa [#allocation4], 0  ;;  %v31_v6 = vpack.c.bf16 %v30_v4, %v29_v3  ;;  %vm26_vm0 = vcmask 261120   ;;  %v236_v7 = vld [vmem:[%s360_s3 + $0x28] sm:$0xff]  ;;  %v235_v8 = vld [vmem:[%s360_s3 + $0x20] sm:$0xff]  ;;  %v271_v13 = vmov 0.0  }
   0x4   :  { %v234_v9 = vld [vmem:[%s360_s3 + $0x18] sm:$0xff]  ;;  %v233_v10 = vld [vmem:[%s360_s3 + $0x10] sm:$0xff]  ;;  %v232_v11 = vld [vmem:[%s360_s3 + $0x8] sm:$0xff]  ;;  %27 = vst.msk [vmem:[#allocation2] sm:$0xff] %vm26_vm0, %v271_v13  ;;  %s176_s21 = sshll.u32 %s362_s5, 4  ;;  %s274_s22 = smov 8   ;;  %s177_s21 = int_to_ptr.hbm [resolvable:$true] %s176_s21 }
   0x5   :  { %v231_v12 = vld [vmem:[%s360_s3] sm:$0xff]  ;;  %28 = vst.msk [vmem:[#allocation2 + $0x8] sm:$0xff] %vm26_vm0, %v271_v13 }
   0x6   :  { %63 = vmatpush.bf16.msra.mxu0 %v229_v1  ;;  %140 = vmatpush.bf16.msra.mxu1 %v237_v5  ;;  %v243_v15 = vld [vmem:[%s359_s2] ss:$0 sm:$0xff]  ;;  %s272_s2 = smov [#allocation3]  }
   0x7   :  { %v244_v26 = vld [vmem:[%s361_s4] ss:$0 sm:$0xff]  ;;  %s174_s18 = sshll.u32 %s272_s2, 4  ;;  %s273_s4 = smov 128   ;;  %s175_s18 = int_to_ptr.vmem [resolvable:$true] %s174_s18 }
   0x9   :  { %196 = vmatmul.msk.bf16.vlgmr.msra.gmra.mxu0 %vm26_vm0, %v31_v6 }
   0xa   :  { %141 = vmatpush.bf16.msra.mxu1 %v236_v7 }
   0xb   :  { %v72_v22 = vld [vmem:[#allocation2] sm:$0xff] }
   0xc   :  { %v73_v25 = vld [vmem:[#allocation2 + $0x8] sm:$0xff] }
   0xe   :  { %142 = vmatpush.bf16.msra.mxu1 %v235_v8 }
  0x12   :  { %143 = vmatpush.bf16.msra.mxu1 %v234_v9 }
  0x16   :  { %144 = vmatpush.bf16.msra.mxu1 %v233_v10 }
  0x1a   :  { %145 = vmatpush.bf16.msra.mxu1 %v232_v11 }
  0x1e   :  { %146 = vmatpush.bf16.msra.mxu1 %v231_v12 }
  0x86   :  { %v65_v14 = vpop.f32.mrf.mxu0 }
  0x87   :  { %v66_v16 = vadd.f32 %v243_v15, %v65_v14 }
  0x89   :  { %v70_v19 = vmax.f32 %v66_v16, 0.0 }
  0x8e   :  { %v67_v17 = vpop.f32.mrf.mxu0 }
  0x8f   :  { %v68_v18 = vadd.f32 %v243_v15, %v67_v17 }
  0x91   :  { %v71_v20 = vmax.f32 %v68_v18, 0.0 }
  0x93   :  { %v74_v21 = vpack.c.bf16 %v71_v20, %v70_v19 }
  0x95   :  { %147 = vmatmul.bf16.vlgmr.msra.gmra.mxu1 %v74_v21 }
 0x112   :  { %v148_v23 = vpop.f32.mrf.mxu1 }
 0x113   :  { %v153_v24 = vadd.f32 %v148_v23, %v72_v22 }
 0x115   :  { %155 = vst.msk [vmem:[#allocation2] sm:$0xff] %vm26_vm0, %v153_v24 }
 0x11a   :  { %v150_v27 = vpop.f32.mrf.mxu1 }
 0x11b   :  { %v154_v28 = vadd.f32 %v150_v27, %v73_v25 }
 0x11c   :  { %v160_v29 = vld [vmem:[#allocation2] sm:$0xff] }
 0x11d   :  { %156 = vst.msk [vmem:[#allocation2 + $0x8] sm:$0xff] %vm26_vm0, %v154_v28  ;;  %v166_v30 = vadd.f32 %v244_v26, %v160_v29 }
 0x11f   :  { %168 = vst.msk [vmem:[#allocation3] sm:$0xff] %vm26_vm0, %v166_v30 }
 0x124   :  { %v161_v31 = vld [vmem:[#allocation2 + $0x8] sm:$0xff] }
 0x125   :  { %v167_v32 = vadd.f32 %v244_v26, %v161_v31 }
 0x127   :  { %169 = vst.msk [vmem:[#allocation3 + $0x8] sm:$0xff] %vm26_vm0, %v167_v32 }
 0x128   :  { %182 = dma.vmem_to_hbm [thread:$0]  %s175_s18, 256, %s177_s21, [#allocation4], %s273_s4, %s273_s4, %s274_s22  }
 0x129   :  { %269 = dma.done.wait [#allocation4], 256  }
 0x12a   :  { %270 = vsyncadd [#allocation4], 4294967040 }
 0x12b   :  { %187 = vsyncpa [#allocation4], 1 }

</bundles_post_ra>
